<compile_context>
chip_gen: v7x
topology: tpu7x:2x2x1
jax: 0.10.0
libtpu: 0.0.40
codegen_flags: <defaults>
</compile_context>

<pallas_src>
import jax
import jax.numpy as jnp
from jax.experimental import pallas as pl
from jax.experimental.pallas import tpu as pltpu

input_size = 4
hidden_size = 5
num_classes = 3


def mlp_kernel(x_ref, w1_ref, b1_ref, w2_ref, b2_ref, o_ref):
    """x_ref: VMEM (input_size, TILE_B); o_ref: VMEM (num_classes, TILE_B).
    w1/b1/w2/b2 are small SMEM-resident parameters read as scalars."""
    x = x_ref[...]  # (input_size, TILE_B) f32, batch on lanes

    # fc1 + ReLU: h[j, :] = relu(sum_k w1[k, j] * x[k, :] + b1[j])
    # Fully unrolled (static trip counts); each op is a scalar*vector VPU op.
    h_rows = []
    for j in range(hidden_size):
        acc = x[0:1, :] * w1_ref[0, j]
        for k in range(1, input_size):
            acc = acc + x[k:k + 1, :] * w1_ref[k, j]
        acc = acc + b1_ref[j]
        h_rows.append(jnp.maximum(acc, 0.0))  # (1, TILE_B) f32

    # fc2: out[c, :] = sum_j w2[j, c] * h[j, :] + b2[c]
    out_rows = []
    for c in range(num_classes):
        acc = h_rows[0] * w2_ref[0, c]
        for j in range(1, hidden_size):
            acc = acc + h_rows[j] * w2_ref[j, c]
        out_rows.append(acc + b2_ref[c])  # (1, TILE_B) f32

    # Single lane-dense, full-tile store (sublane packing goes to the XLU).
    o_ref[...] = jnp.concatenate(out_rows, axis=0).astype(o_ref.dtype)


def _round_up(n, m):
    return ((n + m - 1) // m) * m


def simple_classifier(x, w1, b1, w2, b2, *, tile_b=1024):
    """x: [B, input_size] f32. Returns [B, num_classes] f32 (logits).

    w1: [input_size, hidden], b1: [hidden], w2: [hidden, num_classes],
    b2: [num_classes]  (weights stored transposed vs. PyTorch nn.Linear).
    """
    B = x.shape[0]
    assert tile_b % 128 == 0, "tile_b must be a multiple of the 128-lane width"
    # Don't use a tile larger than the (lane-padded) batch.
    tile_b = min(tile_b, _round_up(B, 128))
    b_pad = _round_up(B, tile_b)

    # Layout plumbing (outside the kernel): batch onto the lane axis and
    # zero-pad to a whole number of tiles; padded columns are sliced off below.
    x_t = x.T  # (input_size, B)
    if b_pad != B:
        x_t = jnp.pad(x_t, ((0, 0), (0, b_pad - B)))

    grid = (b_pad // tile_b,)
    out_t = pl.pallas_call(
        mlp_kernel,
        out_shape=jax.ShapeDtypeStruct((num_classes, b_pad), jnp.float32),
        grid_spec=pl.GridSpec(
            grid=grid,
            in_specs=[
                # Batch-tiled activations in VMEM (lane-dense, double-buffered).
                pl.BlockSpec((input_size, tile_b), lambda i: (0, i)),
                # Tiny parameters: whole arrays resident in SMEM, read as scalars.
                pl.BlockSpec(memory_space=pltpu.MemorySpace.SMEM),  # w1
                pl.BlockSpec(memory_space=pltpu.MemorySpace.SMEM),  # b1
                pl.BlockSpec(memory_space=pltpu.MemorySpace.SMEM),  # w2
                pl.BlockSpec(memory_space=pltpu.MemorySpace.SMEM),  # b2
            ],
            out_specs=pl.BlockSpec((num_classes, tile_b), lambda i: (0, i)),
        ),
        compiler_params=pltpu.CompilerParams(
            # Batch tiles are independent -> shard across both TCs on v7x.
            dimension_semantics=("parallel",),
            # VMEM footprint at tile_b=1024 (double-buffered x + out) is
            # ~60 KiB, far inside the default scoped limit on v5e/v6e/v7x.
        ),
    )(x_t, w1, b1, w2, b2)

    # Drop batch padding and return the PyTorch-facing layout.
    return out_t[:, :B].T


def init_params(key):
    """Deterministic init mimicking nn.Linear's U(-1/sqrt(fan_in), 1/sqrt(fan_in)).
    Weights are stored already transposed to [in, out] for the kernel."""
    k1, k2, k3, k4 = jax.random.split(key, 4)
    bound1 = 1.0 / (input_size ** 0.5)
    bound2 = 1.0 / (hidden_size ** 0.5)
    w1 = jax.random.uniform(k1, (input_size, hidden_size), jnp.float32,
                            -bound1, bound1)
    b1 = jax.random.uniform(k2, (hidden_size,), jnp.float32, -bound1, bound1)
    w2 = jax.random.uniform(k3, (hidden_size, num_classes), jnp.float32,
                            -bound2, bound2)
    b2 = jax.random.uniform(k4, (num_classes,), jnp.float32, -bound2, bound2)
    return w1, b1, w2, b2


if __name__ == "__main__":
    key = jax.random.PRNGKey(0)
    kx, kp = jax.random.split(key)

    # Small test that still exercises multi-step batch tiling + lane padding:
    # 300 rows with tile_b=128 -> grid=(3,), last tile zero-padded.
    batch = 300
    x = jax.random.normal(kx, (batch, input_size), jnp.float32)
    w1, b1, w2, b2 = init_params(kp)

    out = simple_classifier(x, w1, b1, w2, b2, tile_b=128)
    out = jax.block_until_ready(out)

    # Reference check in plain JAX (same math as the PyTorch forward).
    ref = jnp.maximum(x @ w1 + b1, 0.0) @ w2 + b2
    assert out.shape == (batch, num_classes)
    assert jnp.allclose(out, ref, atol=1e-5, rtol=1e-5)

    print("KERNEL_OK")
</pallas_src>

<mosaic_0001>
module attributes {stable_mosaic.version = 11 : i64} {
  func.func @mlp_kernel(%arg0: i32, %arg1: memref<4x128xf32, #tpu.memory_space<vmem>>, %arg2: memref<4x5xf32, #tpu.memory_space<smem>>, %arg3: memref<5xf32, #tpu.memory_space<smem>>, %arg4: memref<5x3xf32, #tpu.memory_space<smem>>, %arg5: memref<3xf32, #tpu.memory_space<smem>>, %arg6: memref<3x128xf32, #tpu.memory_space<vmem>>) attributes {dimension_semantics = [#tpu.dimension_semantics<parallel>], iteration_bounds = array<i64: 3>, scalar_prefetch = 0 : i64, scratch_operands = 0 : i64, tpu.core_type = #tpu.core_type<tc>, window_params = [{transform_indices = @transform_0, window_bounds = array<i64: 4, 128>}, {transform_indices = @transform_1, window_bounds = array<i64: 4, 5>}, {transform_indices = @transform_2, window_bounds = array<i64: 5>}, {transform_indices = @transform_3, window_bounds = array<i64: 5, 3>}, {transform_indices = @transform_4, window_bounds = array<i64: 3>}, {transform_indices = @transform_5, window_bounds = array<i64: 3, 128>}]} {
    %c0 = arith.constant 0 : index
    %c0_0 = arith.constant 0 : index
    %0 = vector.load %arg1[%c0, %c0_0] : memref<4x128xf32, #tpu.memory_space<vmem>>, vector<4x128xf32>
    %1 = vector.extract_strided_slice %0 {offsets = [0, 0], sizes = [1, 128], strides = [1, 1]} : vector<4x128xf32> to vector<1x128xf32>
    %c0_1 = arith.constant 0 : index
    %c0_2 = arith.constant 0 : index
    %2 = memref.load %arg2[%c0_1, %c0_2] : memref<4x5xf32, #tpu.memory_space<smem>>
    %3 = vector.broadcast %2 : f32 to vector<1x128xf32>
    %4 = arith.mulf %1, %3 : vector<1x128xf32>
    %5 = vector.extract_strided_slice %0 {offsets = [1, 0], sizes = [1, 128], strides = [1, 1]} : vector<4x128xf32> to vector<1x128xf32>
    %c1 = arith.constant 1 : index
    %c0_3 = arith.constant 0 : index
    %6 = memref.load %arg2[%c1, %c0_3] : memref<4x5xf32, #tpu.memory_space<smem>>
    %7 = vector.broadcast %6 : f32 to vector<1x128xf32>
    %8 = arith.mulf %5, %7 : vector<1x128xf32>
    %9 = arith.addf %4, %8 : vector<1x128xf32>
    %10 = vector.extract_strided_slice %0 {offsets = [2, 0], sizes = [1, 128], strides = [1, 1]} : vector<4x128xf32> to vector<1x128xf32>
    %c2 = arith.constant 2 : index
    %c0_4 = arith.constant 0 : index
    %11 = memref.load %arg2[%c2, %c0_4] : memref<4x5xf32, #tpu.memory_space<smem>>
    %12 = vector.broadcast %11 : f32 to vector<1x128xf32>
    %13 = arith.mulf %10, %12 : vector<1x128xf32>
    %14 = arith.addf %9, %13 : vector<1x128xf32>
    %15 = vector.extract_strided_slice %0 {offsets = [3, 0], sizes = [1, 128], strides = [1, 1]} : vector<4x128xf32> to vector<1x128xf32>
    %c3 = arith.constant 3 : index
    %c0_5 = arith.constant 0 : index
    %16 = memref.load %arg2[%c3, %c0_5] : memref<4x5xf32, #tpu.memory_space<smem>>
    %17 = vector.broadcast %16 : f32 to vector<1x128xf32>
    %18 = arith.mulf %15, %17 : vector<1x128xf32>
    %19 = arith.addf %14, %18 : vector<1x128xf32>
    %c0_6 = arith.constant 0 : index
    %20 = memref.load %arg3[%c0_6] : memref<5xf32, #tpu.memory_space<smem>>
    %21 = vector.broadcast %20 : f32 to vector<1x128xf32>
    %22 = arith.addf %19, %21 : vector<1x128xf32>
    %cst = arith.constant 0.000000e+00 : f32
    %23 = vector.broadcast %cst : f32 to vector<1x128xf32>
    %24 = arith.maximumf %22, %23 : vector<1x128xf32>
    %25 = vector.extract_strided_slice %0 {offsets = [0, 0], sizes = [1, 128], strides = [1, 1]} : vector<4x128xf32> to vector<1x128xf32>
    %c0_7 = arith.constant 0 : index
    %c1_8 = arith.constant 1 : index
    %26 = memref.load %arg2[%c0_7, %c1_8] : memref<4x5xf32, #tpu.memory_space<smem>>
    %27 = vector.broadcast %26 : f32 to vector<1x128xf32>
    %28 = arith.mulf %25, %27 : vector<1x128xf32>
    %29 = vector.extract_strided_slice %0 {offsets = [1, 0], sizes = [1, 128], strides = [1, 1]} : vector<4x128xf32> to vector<1x128xf32>
    %c1_9 = arith.constant 1 : index
    %c1_10 = arith.constant 1 : index
    %30 = memref.load %arg2[%c1_9, %c1_10] : memref<4x5xf32, #tpu.memory_space<smem>>
    %31 = vector.broadcast %30 : f32 to vector<1x128xf32>
    %32 = arith.mulf %29, %31 : vector<1x128xf32>
    %33 = arith.addf %28, %32 : vector<1x128xf32>
    %34 = vector.extract_strided_slice %0 {offsets = [2, 0], sizes = [1, 128], strides = [1, 1]} : vector<4x128xf32> to vector<1x128xf32>
    %c2_11 = arith.constant 2 : index
    %c1_12 = arith.constant 1 : index
    %35 = memref.load %arg2[%c2_11, %c1_12] : memref<4x5xf32, #tpu.memory_space<smem>>
    %36 = vector.broadcast %35 : f32 to vector<1x128xf32>
    %37 = arith.mulf %34, %36 : vector<1x128xf32>
    %38 = arith.addf %33, %37 : vector<1x128xf32>
    %39 = vector.extract_strided_slice %0 {offsets = [3, 0], sizes = [1, 128], strides = [1, 1]} : vector<4x128xf32> to vector<1x128xf32>
    %c3_13 = arith.constant 3 : index
    %c1_14 = arith.constant 1 : index
    %40 = memref.load %arg2[%c3_13, %c1_14] : memref<4x5xf32, #tpu.memory_space<smem>>
    %41 = vector.broadcast %40 : f32 to vector<1x128xf32>
    %42 = arith.mulf %39, %41 : vector<1x128xf32>
    %43 = arith.addf %38, %42 : vector<1x128xf32>
    %c1_15 = arith.constant 1 : index
    %44 = memref.load %arg3[%c1_15] : memref<5xf32, #tpu.memory_space<smem>>
    %45 = vector.broadcast %44 : f32 to vector<1x128xf32>
    %46 = arith.addf %43, %45 : vector<1x128xf32>
    %cst_16 = arith.constant 0.000000e+00 : f32
    %47 = vector.broadcast %cst_16 : f32 to vector<1x128xf32>
    %48 = arith.maximumf %46, %47 : vector<1x128xf32>
    %49 = vector.extract_strided_slice %0 {offsets = [0, 0], sizes = [1, 128], strides = [1, 1]} : vector<4x128xf32> to vector<1x128xf32>
    %c0_17 = arith.constant 0 : index
    %c2_18 = arith.constant 2 : index
    %50 = memref.load %arg2[%c0_17, %c2_18] : memref<4x5xf32, #tpu.memory_space<smem>>
    %51 = vector.broadcast %50 : f32 to vector<1x128xf32>
    %52 = arith.mulf %49, %51 : vector<1x128xf32>
    %53 = vector.extract_strided_slice %0 {offsets = [1, 0], sizes = [1, 128], strides = [1, 1]} : vector<4x128xf32> to vector<1x128xf32>
    %c1_19 = arith.constant 1 : index
    %c2_20 = arith.constant 2 : index
    %54 = memref.load %arg2[%c1_19, %c2_20] : memref<4x5xf32, #tpu.memory_space<smem>>
    %55 = vector.broadcast %54 : f32 to vector<1x128xf32>
    %56 = arith.mulf %53, %55 : vector<1x128xf32>
    %57 = arith.addf %52, %56 : vector<1x128xf32>
    %58 = vector.extract_strided_slice %0 {offsets = [2, 0], sizes = [1, 128], strides = [1, 1]} : vector<4x128xf32> to vector<1x128xf32>
    %c2_21 = arith.constant 2 : index
    %c2_22 = arith.constant 2 : index
    %59 = memref.load %arg2[%c2_21, %c2_22] : memref<4x5xf32, #tpu.memory_space<smem>>
    %60 = vector.broadcast %59 : f32 to vector<1x128xf32>
    %61 = arith.mulf %58, %60 : vector<1x128xf32>
    %62 = arith.addf %57, %61 : vector<1x128xf32>
    %63 = vector.extract_strided_slice %0 {offsets = [3, 0], sizes = [1, 128], strides = [1, 1]} : vector<4x128xf32> to vector<1x128xf32>
    %c3_23 = arith.constant 3 : index
    %c2_24 = arith.constant 2 : index
    %64 = memref.load %arg2[%c3_23, %c2_24] : memref<4x5xf32, #tpu.memory_space<smem>>
    %65 = vector.broadcast %64 : f32 to vector<1x128xf32>
    %66 = arith.mulf %63, %65 : vector<1x128xf32>
    %67 = arith.addf %62, %66 : vector<1x128xf32>
    %c2_25 = arith.constant 2 : index
    %68 = memref.load %arg3[%c2_25] : memref<5xf32, #tpu.memory_space<smem>>
    %69 = vector.broadcast %68 : f32 to vector<1x128xf32>
    %70 = arith.addf %67, %69 : vector<1x128xf32>
    %cst_26 = arith.constant 0.000000e+00 : f32
    %71 = vector.broadcast %cst_26 : f32 to vector<1x128xf32>
    %72 = arith.maximumf %70, %71 : vector<1x128xf32>
    %73 = vector.extract_strided_slice %0 {offsets = [0, 0], sizes = [1, 128], strides = [1, 1]} : vector<4x128xf32> to vector<1x128xf32>
    %c0_27 = arith.constant 0 : index
    %c3_28 = arith.constant 3 : index
    %74 = memref.load %arg2[%c0_27, %c3_28] : memref<4x5xf32, #tpu.memory_space<smem>>
    %75 = vector.broadcast %74 : f32 to vector<1x128xf32>
    %76 = arith.mulf %73, %75 : vector<1x128xf32>
    %77 = vector.extract_strided_slice %0 {offsets = [1, 0], sizes = [1, 128], strides = [1, 1]} : vector<4x128xf32> to vector<1x128xf32>
    %c1_29 = arith.constant 1 : index
    %c3_30 = arith.constant 3 : index
    %78 = memref.load %arg2[%c1_29, %c3_30] : memref<4x5xf32, #tpu.memory_space<smem>>
    %79 = vector.broadcast %78 : f32 to vector<1x128xf32>
    %80 = arith.mulf %77, %79 : vector<1x128xf32>
    %81 = arith.addf %76, %80 : vector<1x128xf32>
    %82 = vector.extract_strided_slice %0 {offsets = [2, 0], sizes = [1, 128], strides = [1, 1]} : vector<4x128xf32> to vector<1x128xf32>
    %c2_31 = arith.constant 2 : index
    %c3_32 = arith.constant 3 : index
    %83 = memref.load %arg2[%c2_31, %c3_32] : memref<4x5xf32, #tpu.memory_space<smem>>
    %84 = vector.broadcast %83 : f32 to vector<1x128xf32>
    %85 = arith.mulf %82, %84 : vector<1x128xf32>
    %86 = arith.addf %81, %85 : vector<1x128xf32>
    %87 = vector.extract_strided_slice %0 {offsets = [3, 0], sizes = [1, 128], strides = [1, 1]} : vector<4x128xf32> to vector<1x128xf32>
    %c3_33 = arith.constant 3 : index
    %c3_34 = arith.constant 3 : index
    %88 = memref.load %arg2[%c3_33, %c3_34] : memref<4x5xf32, #tpu.memory_space<smem>>
    %89 = vector.broadcast %88 : f32 to vector<1x128xf32>
    %90 = arith.mulf %87, %89 : vector<1x128xf32>
    %91 = arith.addf %86, %90 : vector<1x128xf32>
    %c3_35 = arith.constant 3 : index
    %92 = memref.load %arg3[%c3_35] : memref<5xf32, #tpu.memory_space<smem>>
    %93 = vector.broadcast %92 : f32 to vector<1x128xf32>
    %94 = arith.addf %91, %93 : vector<1x128xf32>
    %cst_36 = arith.constant 0.000000e+00 : f32
    %95 = vector.broadcast %cst_36 : f32 to vector<1x128xf32>
    %96 = arith.maximumf %94, %95 : vector<1x128xf32>
    %97 = vector.extract_strided_slice %0 {offsets = [0, 0], sizes = [1, 128], strides = [1, 1]} : vector<4x128xf32> to vector<1x128xf32>
    %c0_37 = arith.constant 0 : index
    %c4 = arith.constant 4 : index
    %98 = memref.load %arg2[%c0_37, %c4] : memref<4x5xf32, #tpu.memory_space<smem>>
    %99 = vector.broadcast %98 : f32 to vector<1x128xf32>
    %100 = arith.mulf %97, %99 : vector<1x128xf32>
    %101 = vector.extract_strided_slice %0 {offsets = [1, 0], sizes = [1, 128], strides = [1, 1]} : vector<4x128xf32> to vector<1x128xf32>
    %c1_38 = arith.constant 1 : index
    %c4_39 = arith.constant 4 : index
    %102 = memref.load %arg2[%c1_38, %c4_39] : memref<4x5xf32, #tpu.memory_space<smem>>
    %103 = vector.broadcast %102 : f32 to vector<1x128xf32>
    %104 = arith.mulf %101, %103 : vector<1x128xf32>
    %105 = arith.addf %100, %104 : vector<1x128xf32>
    %106 = vector.extract_strided_slice %0 {offsets = [2, 0], sizes = [1, 128], strides = [1, 1]} : vector<4x128xf32> to vector<1x128xf32>
    %c2_40 = arith.constant 2 : index
    %c4_41 = arith.constant 4 : index
    %107 = memref.load %arg2[%c2_40, %c4_41] : memref<4x5xf32, #tpu.memory_space<smem>>
    %108 = vector.broadcast %107 : f32 to vector<1x128xf32>
    %109 = arith.mulf %106, %108 : vector<1x128xf32>
    %110 = arith.addf %105, %109 : vector<1x128xf32>
    %111 = vector.extract_strided_slice %0 {offsets = [3, 0], sizes = [1, 128], strides = [1, 1]} : vector<4x128xf32> to vector<1x128xf32>
    %c3_42 = arith.constant 3 : index
    %c4_43 = arith.constant 4 : index
    %112 = memref.load %arg2[%c3_42, %c4_43] : memref<4x5xf32, #tpu.memory_space<smem>>
    %113 = vector.broadcast %112 : f32 to vector<1x128xf32>
    %114 = arith.mulf %111, %113 : vector<1x128xf32>
    %115 = arith.addf %110, %114 : vector<1x128xf32>
    %c4_44 = arith.constant 4 : index
    %116 = memref.load %arg3[%c4_44] : memref<5xf32, #tpu.memory_space<smem>>
    %117 = vector.broadcast %116 : f32 to vector<1x128xf32>
    %118 = arith.addf %115, %117 : vector<1x128xf32>
    %cst_45 = arith.constant 0.000000e+00 : f32
    %119 = vector.broadcast %cst_45 : f32 to vector<1x128xf32>
    %120 = arith.maximumf %118, %119 : vector<1x128xf32>
    %c0_46 = arith.constant 0 : index
    %c0_47 = arith.constant 0 : index
    %121 = memref.load %arg4[%c0_46, %c0_47] : memref<5x3xf32, #tpu.memory_space<smem>>
    %122 = vector.broadcast %121 : f32 to vector<1x128xf32>
    %123 = arith.mulf %24, %122 : vector<1x128xf32>
    %c1_48 = arith.constant 1 : index
    %c0_49 = arith.constant 0 : index
    %124 = memref.load %arg4[%c1_48, %c0_49] : memref<5x3xf32, #tpu.memory_space<smem>>
    %125 = vector.broadcast %124 : f32 to vector<1x128xf32>
    %126 = arith.mulf %48, %125 : vector<1x128xf32>
    %127 = arith.addf %123, %126 : vector<1x128xf32>
    %c2_50 = arith.constant 2 : index
    %c0_51 = arith.constant 0 : index
    %128 = memref.load %arg4[%c2_50, %c0_51] : memref<5x3xf32, #tpu.memory_space<smem>>
    %129 = vector.broadcast %128 : f32 to vector<1x128xf32>
    %130 = arith.mulf %72, %129 : vector<1x128xf32>
    %131 = arith.addf %127, %130 : vector<1x128xf32>
    %c3_52 = arith.constant 3 : index
    %c0_53 = arith.constant 0 : index
    %132 = memref.load %arg4[%c3_52, %c0_53] : memref<5x3xf32, #tpu.memory_space<smem>>
    %133 = vector.broadcast %132 : f32 to vector<1x128xf32>
    %134 = arith.mulf %96, %133 : vector<1x128xf32>
    %135 = arith.addf %131, %134 : vector<1x128xf32>
    %c4_54 = arith.constant 4 : index
    %c0_55 = arith.constant 0 : index
    %136 = memref.load %arg4[%c4_54, %c0_55] : memref<5x3xf32, #tpu.memory_space<smem>>
    %137 = vector.broadcast %136 : f32 to vector<1x128xf32>
    %138 = arith.mulf %120, %137 : vector<1x128xf32>
    %139 = arith.addf %135, %138 : vector<1x128xf32>
    %c0_56 = arith.constant 0 : index
    %140 = memref.load %arg5[%c0_56] : memref<3xf32, #tpu.memory_space<smem>>
    %141 = vector.broadcast %140 : f32 to vector<1x128xf32>
    %142 = arith.addf %139, %141 : vector<1x128xf32>
    %c0_57 = arith.constant 0 : index
    %c1_58 = arith.constant 1 : index
    %143 = memref.load %arg4[%c0_57, %c1_58] : memref<5x3xf32, #tpu.memory_space<smem>>
    %144 = vector.broadcast %143 : f32 to vector<1x128xf32>
    %145 = arith.mulf %24, %144 : vector<1x128xf32>
    %c1_59 = arith.constant 1 : index
    %c1_60 = arith.constant 1 : index
    %146 = memref.load %arg4[%c1_59, %c1_60] : memref<5x3xf32, #tpu.memory_space<smem>>
    %147 = vector.broadcast %146 : f32 to vector<1x128xf32>
    %148 = arith.mulf %48, %147 : vector<1x128xf32>
    %149 = arith.addf %145, %148 : vector<1x128xf32>
    %c2_61 = arith.constant 2 : index
    %c1_62 = arith.constant 1 : index
    %150 = memref.load %arg4[%c2_61, %c1_62] : memref<5x3xf32, #tpu.memory_space<smem>>
    %151 = vector.broadcast %150 : f32 to vector<1x128xf32>
    %152 = arith.mulf %72, %151 : vector<1x128xf32>
    %153 = arith.addf %149, %152 : vector<1x128xf32>
    %c3_63 = arith.constant 3 : index
    %c1_64 = arith.constant 1 : index
    %154 = memref.load %arg4[%c3_63, %c1_64] : memref<5x3xf32, #tpu.memory_space<smem>>
    %155 = vector.broadcast %154 : f32 to vector<1x128xf32>
    %156 = arith.mulf %96, %155 : vector<1x128xf32>
    %157 = arith.addf %153, %156 : vector<1x128xf32>
    %c4_65 = arith.constant 4 : index
    %c1_66 = arith.constant 1 : index
    %158 = memref.load %arg4[%c4_65, %c1_66] : memref<5x3xf32, #tpu.memory_space<smem>>
    %159 = vector.broadcast %158 : f32 to vector<1x128xf32>
    %160 = arith.mulf %120, %159 : vector<1x128xf32>
    %161 = arith.addf %157, %160 : vector<1x128xf32>
    %c1_67 = arith.constant 1 : index
    %162 = memref.load %arg5[%c1_67] : memref<3xf32, #tpu.memory_space<smem>>
    %163 = vector.broadcast %162 : f32 to vector<1x128xf32>
    %164 = arith.addf %161, %163 : vector<1x128xf32>
    %c0_68 = arith.constant 0 : index
    %c2_69 = arith.constant 2 : index
    %165 = memref.load %arg4[%c0_68, %c2_69] : memref<5x3xf32, #tpu.memory_space<smem>>
    %166 = vector.broadcast %165 : f32 to vector<1x128xf32>
    %167 = arith.mulf %24, %166 : vector<1x128xf32>
    %c1_70 = arith.constant 1 : index
    %c2_71 = arith.constant 2 : index
    %168 = memref.load %arg4[%c1_70, %c2_71] : memref<5x3xf32, #tpu.memory_space<smem>>
    %169 = vector.broadcast %168 : f32 to vector<1x128xf32>
    %170 = arith.mulf %48, %169 : vector<1x128xf32>
    %171 = arith.addf %167, %170 : vector<1x128xf32>
    %c2_72 = arith.constant 2 : index
    %c2_73 = arith.constant 2 : index
    %172 = memref.load %arg4[%c2_72, %c2_73] : memref<5x3xf32, #tpu.memory_space<smem>>
    %173 = vector.broadcast %172 : f32 to vector<1x128xf32>
    %174 = arith.mulf %72, %173 : vector<1x128xf32>
    %175 = arith.addf %171, %174 : vector<1x128xf32>
    %c3_74 = arith.constant 3 : index
    %c2_75 = arith.constant 2 : index
    %176 = memref.load %arg4[%c3_74, %c2_75] : memref<5x3xf32, #tpu.memory_space<smem>>
    %177 = vector.broadcast %176 : f32 to vector<1x128xf32>
    %178 = arith.mulf %96, %177 : vector<1x128xf32>
    %179 = arith.addf %175, %178 : vector<1x128xf32>
    %c4_76 = arith.constant 4 : index
    %c2_77 = arith.constant 2 : index
    %180 = memref.load %arg4[%c4_76, %c2_77] : memref<5x3xf32, #tpu.memory_space<smem>>
    %181 = vector.broadcast %180 : f32 to vector<1x128xf32>
    %182 = arith.mulf %120, %181 : vector<1x128xf32>
    %183 = arith.addf %179, %182 : vector<1x128xf32>
    %c2_78 = arith.constant 2 : index
    %184 = memref.load %arg5[%c2_78] : memref<3xf32, #tpu.memory_space<smem>>
    %185 = vector.broadcast %184 : f32 to vector<1x128xf32>
    %186 = arith.addf %183, %185 : vector<1x128xf32>
    %187 = tpu.concatenate %142, %164, %186 in 0 : vector<1x128xf32>, vector<1x128xf32>, vector<1x128xf32> -> vector<3x128xf32>
    %c0_79 = arith.constant 0 : index
    %c0_80 = arith.constant 0 : index
    %188 = vector.load %arg6[%c0_79, %c0_80] : memref<3x128xf32, #tpu.memory_space<vmem>>, vector<3x128xf32>
    tpu.vector_store %arg6[%c0_79, %c0_80], %187 {strides = array<i32>} : memref<3x128xf32, #tpu.memory_space<vmem>>, vector<3x128xf32>,
    return
  }
  func.func @transform_0(%arg0: i32) -> (i32, i32) {
    %c0_i32 = arith.constant 0 : i32
    %c0_i32_0 = arith.constant 0 : i32
    return %c0_i32, %arg0 : i32, i32
  }
  func.func @transform_1(%arg0: i32) -> (i32, i32) {
    %c0_i32 = arith.constant 0 : i32
    %c0_i32_0 = arith.constant 0 : i32
    %c0_i32_1 = arith.constant 0 : i32
    return %c0_i32, %c0_i32_0 : i32, i32
  }
  func.func @transform_2(%arg0: i32) -> i32 {
    %c0_i32 = arith.constant 0 : i32
    %c0_i32_0 = arith.constant 0 : i32
    return %c0_i32 : i32
  }
  func.func @transform_3(%arg0: i32) -> (i32, i32) {
    %c0_i32 = arith.constant 0 : i32
    %c0_i32_0 = arith.constant 0 : i32
    %c0_i32_1 = arith.constant 0 : i32
    return %c0_i32, %c0_i32_0 : i32, i32
  }
  func.func @transform_4(%arg0: i32) -> i32 {
    %c0_i32 = arith.constant 0 : i32
    %c0_i32_0 = arith.constant 0 : i32
    return %c0_i32 : i32
  }
  func.func @transform_5(%arg0: i32) -> (i32, i32) {
    %c0_i32 = arith.constant 0 : i32
    %c0_i32_0 = arith.constant 0 : i32
    return %c0_i32, %arg0 : i32, i32
  }
}

</mosaic_0001>

<bundles_post_ra>
// kernel: tpu_custom_call.1
= control target key start
LH: loop header
LB: loop body
LE: loop exit
PB: predicated region body
PF: predicated region fallthrough
CT: control target
= control target key end

     0   :  { %10 = vsyncpa [#allocation4], 0  ;;  %s1233_s0 = inlined_call_operand.vmem [shape: f32[4,384], index: 0, kind: input, shape index: {}]   ;;  %s1234_s1 = inlined_call_operand.hbm [shape: f32[4,5], index: 1, kind: input, shape index: {}]   ;;  %s1235_s2 = inlined_call_operand.vmem [shape: f32[5], index: 2, kind: input, shape index: {}]   ;;  %s1236_s3 = inlined_call_operand.vmem [shape: f32[5,3], index: 3, kind: input, shape index: {}]   ;;  %s1237_s4 = inlined_call_operand.vmem [shape: f32[3], index: 4, kind: input, shape index: {}]   ;;  %s1238_s5 = inlined_call_operand.hbm [shape: f32[3,384], index: 5, kind: output, shape index: {}]  }
   0x1   :  { %11 = vsyncpa [#allocation5], 0 }
   0x2   :  { %12 = vsyncpa [#allocation8], 0 }
   0x3   :  { %13 = vsyncpa [#allocation3], 0 }
   0x4   :  { %15 = vsyncpa [#allocation3 + $0x1], 0  ;;  %s910_s18 = smov 0   ;;  %s912_s19 = smov 0  }
   0x5   :  { %s914_s20 = smov 0   ;;  %s916_s21 = smov 0  }
   0x6 LB: > { %s931_s22 = sadd.s32 4294967295, %s873_s21   ;;  %s604_s23 = sadd.s32 4294967294, %s873_s21   ;;  %s873_s21 = sphi %s916_s21, %s1253_s21   ;;  %s869_s20 = sphi %s914_s20, %s1252_s20   ;;  %s865_s19 = sphi %s912_s19, %s1251_s19   ;;  %s861_s18 = sphi %s910_s18, %s1250_s18  }
   0x7   : > { %s935_s24 = sadd.s32 1, %s873_s21   ;;  %s138_s25 = sadd.s32 1, %s869_s20 }
   0x8   : > { %s135_s26 = ssub.s32 %s873_s21, %s935_s24  ;;  %p148_p0 = scmp.ne.s32.totalorder %s869_s20, %s865_s19 }
   0x9   : > { %p136_p1 = scmp.eq.s32.totalorder %s135_s26, 0  ;;  %p149_p2 = scmp.eq.s32.totalorder %s931_s22, 2 }
   0xa   : > { %p154_p3 = scmp.ne.s32.totalorder %s865_s19, %s861_s18  ;;  %p155_p4 = scmp.eq.s32.totalorder %s604_s23, 2 }
   0xb   : > { %s946_s27 = scalar_select %p136_p1, %s869_s20, %s138_s25  }
   0xc   : > { %p948_p5 = por %p149_p2, %p148_p0  ;;  %p952_p6 = por %p155_p4, %p154_p3 }
   0xd   : > { %p605_p7 = scmp.ge.s32.totalorder %s873_s21, 1  ;;  %p162_p8 = scmp.lt.s32.totalorder %s873_s21, 4 }
   0xe   : > { %p1239_p9 = scmp.eq.s32.totalorder %s931_s22, 0  ;;  %s195_s8 = sshll.u32 %s1236_s3, 4  ;;  %s196_s8 = int_to_ptr.vmem [resolvable:$true] %s195_s8 }
   0xf   : > { %p959_p10 = pnand %p605_p7, %p162_p8  ;;  %s184_s11 = sshll.u32 %s1235_s2, 4  ;;  %s977_s11 = int_to_ptr.vmem [resolvable:$true] %s184_s11 }
  0x10   : > { %s206_s15 = sshll.u32 %s1237_s4, 4  ;;  %s741_s16 = scalar_lea.vmem %s196_s8, 128  ;;  %s982_s15 = int_to_ptr.vmem [resolvable:$true] %s206_s15 }
  0x11   : > { %p679_p11 = pneg %p959_p10  ;;  %p742_p13 = scmp.ne.s32.totalorder %s196_s8, %s741_s16 }
  0x12   : > { %p749_p3 = scmp.lt.s32.totalorder %s196_s8, %s196_s8  ;;  %p750_p4 = scmp.lt.s32.totalorder %s741_s16, %s741_s16 }
  0x13   : > { %p973_p12 = pnand %p1239_p9, %p679_p11 }
  0x14   : > { %p751_p7 = por %p750_p4, %p749_p3 }
  0x15   : > { %p743_p0 = pneg %p973_p12 }
  0x17   : > { %p744_p1 = pnand %p743_p0, %p742_p13 }
  0x19   : > { %p745_p2 = pneg %p744_p1 }
  0x1b   : > { %p752_p8 = pnand %p751_p7, %p745_p2 }
  0x1d   : > { %755 = shalt.err (!%p752_p8)
}
  0x1e   : > { %s875_s17 = smov [#allocation7]   ;;  %s756_s26 = scalar_lea.hbm %s1234_s1, 64 }
  0x1f   : > { %688 = dma.vmem_to_smem (!%p973_p12), %s196_s8, 128, %s875_s17, [#allocation8]  }
  0x20   : > { %p757_p11 = scmp.ne.s32.totalorder %s1234_s1, %s756_s26  ;;  %p763_p2 = scmp.lt.u32.totalorder %s756_s26, %s1234_s1 }
  0x22   : > { %p759_p13 = pnand %p757_p11, %p743_p0 }
  0x24   : > { %p760_p1 = pneg %p759_p13 }
  0x26   : > { %p765_p3 = pnand %p763_p2, %p760_p1 }
  0x28   : > { %768 = shalt.err (!%p765_p3)
}
  0x29   : > { %s876_s13 = smov [#allocation2]   ;;  %s769_s16 = scalar_lea.vmem %s977_s11, 16 }
  0x2a   : > { %682 = dma.hbm_to_smem (!%p973_p12), %s1234_s1, 64, %s876_s13, [#allocation4]  }
  0x2b   : > { %p770_p4 = scmp.ne.s32.totalorder %s977_s11, %s769_s16  ;;  %p777_p11 = scmp.lt.s32.totalorder %s977_s11, %s977_s11 }
  0x2c   : > { %p778_p13 = scmp.lt.s32.totalorder %s769_s16, %s769_s16 }
  0x2d   : > { %p772_p7 = pnand %p770_p4, %p743_p0 }
  0x2e   : > { %p779_p1 = por %p778_p13, %p777_p11 }
  0x2f   : > { %p773_p8 = pneg %p772_p7 }
  0x31   : > { %p780_p2 = pnand %p779_p1, %p773_p8 }
  0x33   : > { %783 = shalt.err (!%p780_p2)
}
  0x34   : > { %s877_s17 = smov [#allocation6]   ;;  %s784_s23 = scalar_lea.vmem %s982_s15, 16 }
  0x35   : > { %685 = dma.vmem_to_smem (!%p973_p12), %s977_s11, 16, %s877_s17, [#allocation5]  }
  0x36   : > { %p785_p3 = scmp.ne.s32.totalorder %s982_s15, %s784_s23  ;;  %p792_p9 = scmp.lt.s32.totalorder %s982_s15, %s982_s15 }
  0x37   : > { %p793_p11 = scmp.lt.s32.totalorder %s784_s23, %s784_s23 }
  0x38   : > { %p787_p4 = pnand %p785_p3, %p743_p0 }
  0x39   : > { %p794_p8 = por %p793_p11, %p792_p9 }
  0x3a   : > { %p788_p7 = pneg %p787_p4 }
  0x3c   : > { %p795_p13 = pnand %p794_p8, %p788_p7 }
  0x3e   : > { %798 = shalt.err (!%p795_p13)
}
  0x3f   : > { %s878_s25 = smov [#allocation9]   ;;  %226 = sbr.rel (%p959_p10) target bundleno = 145 (0x91), region = 40 }
  0x40   : > { %691 = dma.vmem_to_smem (!%p973_p12), %s982_s15, 16, %s878_s25, [#allocation8]  }
  0x41   : > { %p1244_p1 = scmp.eq.s32.totalorder (!%p959_p10), %s931_s22, 0 }
  0x46   : > { %844 = dma.done.wait (%p1244_p1), [#allocation4], 64   ;;  %p1245_p0 = pmov %p1244_p1 }
  0x48   : > { %846 = vsyncadd (%p1245_p0), [#allocation4], 4294967232  ;;  %p1246_p2 = pmov %p1245_p0 }
  0x49   : > { %p1247_p9 = pmov %p1245_p0 }
  0x4a   : > { %848 = dma.done.wait (%p1246_p2), [#allocation5], 16  }
  0x4b   : > { %850 = vsyncadd (%p1247_p9), [#allocation5], 4294967280  ;;  %p1248_p3 = pmov %p1245_p0 }
  0x4c   : > { %p1249_p12 = pmov %p1245_p0 }
  0x4d   : > { %852 = dma.done.wait (%p1248_p3), [#allocation8], 144  }
  0x4e   : > { %854 = vsyncadd (%p1249_p12), [#allocation8], 4294967152 }
  0x4f   : > { %244 = sfence }
  0x50   : > { %p266_p10 = scmp.lt.s32.totalorder %s931_s22, 2  ;;  %s271_s30 = sld [smem:[#allocation2]]  ;;  %vm483_vm0 = vcmask 1040384   ;;  %vm485_vm1 = vcmask 1041408  }
  0x51   : > { %s618_s11 = sld [smem:[#allocation2 + $0x80]]  ;;  %s621_s8 = sld [smem:[#allocation2 + $0x1]] }
  0x52   : > { %s267_s12 = scalar_select %p266_p10, %s931_s22, 2 }
  0x53   : > { %s619_s15 = sld [smem:[#allocation2 + $0x100]]  ;;  %s1051_s14 = sld [smem:[#allocation2 + $0x81]] }
  0x54   : > { %s620_s26 = sld [smem:[#allocation2 + $0x180]]  ;;  %s617_s6 = sshll.u32 %s267_s12, 2 }
  0x55   : > { %s1044_s7 = sld [smem:[#allocation6]]  ;;  %s269_s13 = scalar_lea.vmem %s1233_s0, %s617_s6 }
  0x56   : > { %v1049_v0 = vld [vmem:[%s269_s13] sm:$0xf]  ;;  %v272_v1 = vstv %s271_s30  ;;  %s1053_s16 = sld [smem:[#allocation2 + $0x101]]  ;;  %s1059_s25 = sld [smem:[#allocation2 + $0x2]] }
  0x57   : > { %v275_v2 = vstv %s618_s11  ;;  %s624_s17 = sld [smem:[#allocation2 + $0x181]]  ;;  %v273_v3 = vmul.f32 %v272_v1, %v1049_v0  ;;  %s1061_s12 = sld [smem:[#allocation2 + $0x82]]  ;;  %v300_v10 = vstv %s621_s8 }
  0x58   : > { %s1055_s23 = sld [smem:[#allocation6 + $0x1]]  ;;  %v276_v4 = vmul.f32 %v275_v2, %v1049_v0  ;;  %s1063_s30 = sld [smem:[#allocation2 + $0x102]]  ;;  %v301_v15 = vmul.f32 %v300_v10, %v1049_v0 }
  0x59   : > { %v282_v5 = vstv %s619_s15  ;;  %s1065_s6 = sld [smem:[#allocation2 + $0x182]]  ;;  %s1069_s11 = sld [smem:[#allocation2 + $0x3]]  ;;  %v303_v16 = vstv %s1051_s14 }
  0x5a   : > { %v289_v6 = vstv %s620_s26  ;;  %v278_v7 = vrot.slane %v276_v4, 1  ;;  %v283_v8 = vmul.f32 %v282_v5, %v1049_v0  ;;  %s1071_s9 = sld [smem:[#allocation6 + $0x2]]  ;;  %s1074_s15 = sld [smem:[#allocation2 + $0x83]]  ;;  %v304_v20 = vmul.f32 %v303_v16, %v1049_v0 }
  0x5b   : > { %v290_v9 = vmul.f32 %v289_v6, %v1049_v0  ;;  %v296_v14 = vstv %s1044_s7  ;;  %s1076_s26 = sld [smem:[#allocation2 + $0x103]]  ;;  %s1086_s7 = sld [smem:[#allocation2 + $0x4]] }
  0x5c   : > { %v280_v11 = vadd.f32 %v278_v7, %v273_v3  ;;  %v285_v12 = vrot.slane %v283_v8, 2  ;;  %v310_v17 = vstv %s1053_s16  ;;  %s1081_s10 = sld [smem:[#allocation2 + $0x183]]  ;;  %v328_v23 = vstv %s1059_s25  ;;  %s1093_s13 = sld [smem:[#allocation2 + $0x84]] }
  0x5d   : > { %v292_v13 = vrot.slane %v290_v9, 3  ;;  %v317_v18 = vstv %s624_s17  ;;  %v311_v21 = vmul.f32 %v310_v17, %v1049_v0  ;;  %v331_v24 = vstv %s1061_s12  ;;  %s1095_s8 = sld [smem:[#allocation2 + $0x104]]  ;;  %s1101_s14 = sld [smem:[#allocation6 + $0x3]] }
  0x5e   : > { %v287_v19 = vadd.f32 %v285_v12, %v280_v11  ;;  %v318_v22 = vmul.f32 %v317_v18, %v1049_v0  ;;  %v338_v25 = vstv %s1063_s30  ;;  %v306_v28 = vrot.slane %v304_v20, 1  ;;  %s1104_s16 = sld [smem:[#allocation2 + $0x184]]  ;;  %s1106_s17 = sld [smem:[#allocation7]] }
  0x5f   : > { %v345_v26 = vstv %s1065_s6  ;;  %v313_v29 = vrot.slane %v311_v21, 2  ;;  %v324_v30 = vstv %s1055_s23  ;;  %v329_v31 = vmul.f32 %v328_v23, %v1049_v0  ;;  %s1112_s23 = sld [smem:[#allocation7 + $0x80]]  ;;  %s1123_s12 = sld [smem:[#allocation6 + $0x4]] }
  0x60   : > { %v294_v27 = vadd.f32 %v292_v13, %v287_v19  ;;  %v332_v32 = vmul.f32 %v331_v24, %v1049_v0  ;;  %v339_v33 = vmul.f32 %v338_v25, %v1049_v0  ;;  %v346_v34 = vmul.f32 %v345_v26, %v1049_v0  ;;  %s1114_s25 = sld [smem:[#allocation7 + $0x100]]  ;;  %s1128_s6 = sld [smem:[#allocation7 + $0x1]] }
  0x61   : > { %v308_v36 = vadd.f32 %v306_v28, %v301_v15  ;;  %v320_v37 = vrot.slane %v318_v22, 3  ;;  %v356_v38 = vstv %s1069_s11  ;;  %v352_v42 = vstv %s1071_s9  ;;  %s1125_s30 = sld [smem:[#allocation7 + $0x180]]  ;;  %s1130_s11 = sld [smem:[#allocation7 + $0x81]] }
  0x62   : > { %v297_v35 = vadd.f32 %v296_v14, %v294_v27  ;;  %v334_v39 = vrot.slane %v332_v32, 1  ;;  %v341_v40 = vrot.slane %v339_v33, 2  ;;  %v348_v41 = vrot.slane %v346_v34, 3  ;;  %s1134_s9 = sld [smem:[#allocation7 + $0x101]] }
  0x63   : > { %v315_v43 = vadd.f32 %v313_v29, %v308_v36  ;;  %v357_v44 = vmul.f32 %v356_v38, %v1049_v0  ;;  %v359_v45 = vstv %s1074_s15  ;;  %v366_v46 = vstv %s1076_s26  ;;  %s1136_s15 = sld [smem:[#allocation7 + $0x181]]  ;;  %s1143_s26 = sld [smem:[#allocation7 + $0x200]] }
  0x64   : > { %v336_v47 = vadd.f32 %v334_v39, %v329_v31  ;;  %v360_v48 = vmul.f32 %v359_v45, %v1049_v0  ;;  %v367_v49 = vmul.f32 %v366_v46, %v1049_v0  ;;  %v373_v50 = vstv %s1081_s10  ;;  %s1145_s10 = sld [smem:[#allocation7 + $0x201]] }
  0x65   : > { %v1119_v51 = vmax.f32 %v297_v35, 0.0  ;;  %v322_v52 = vadd.f32 %v320_v37, %v315_v43  ;;  %v374_v53 = vmul.f32 %v373_v50, %v1049_v0  ;;  %v384_v54 = vstv %s1086_s7  ;;  %s1147_s7 = sld [smem:[#allocation7 + $0x2]] }
  0x66   : > { %v343_v55 = vadd.f32 %v341_v40, %v336_v47  ;;  %v362_v56 = vrot.slane %v360_v48, 1  ;;  %v369_v57 = vrot.slane %v367_v49, 2  ;;  %v385_v58 = vmul.f32 %v384_v54, %v1049_v0 }
  0x67   : > { %v325_v59 = vadd.f32 %v324_v30, %v322_v52  ;;  %v376_v60 = vrot.slane %v374_v53, 3  ;;  %v387_v61 = vstv %s1093_s13  ;;  %v394_v62 = vstv %s1095_s8  ;;  %s1153_s13 = sld [smem:[#allocation7 + $0x82]] }
  0x68   : > { %v350_v63 = vadd.f32 %v348_v41, %v343_v55  ;;  %v364_v1 = vadd.f32 %v362_v56, %v357_v44  ;;  %v388_v2 = vmul.f32 %v387_v61, %v1049_v0  ;;  %v395_v3 = vmul.f32 %v394_v62, %v1049_v0  ;;  %s1155_s8 = sld [smem:[#allocation7 + $0x102]] }
  0x69   : > { %v326_v4 = vmax.f32 %v325_v59, 0.0  ;;  %v380_v5 = vstv %s1101_s14  ;;  %v401_v6 = vstv %s1104_s16  ;;  %v412_v7 = vstv %s1106_s17  ;;  %s1159_s14 = sld [smem:[#allocation7 + $0x182]]  ;;  %s1163_s17 = sld [smem:[#allocation9]] }
  0x6a   : > { %v353_v8 = vadd.f32 %v352_v42, %v350_v63  ;;  %v371_v9 = vadd.f32 %v369_v57, %v364_v1  ;;  %v390_v10 = vrot.slane %v388_v2, 1  ;;  %v397_v11 = vrot.slane %v395_v3, 2  ;;  %s1161_s16 = sld [smem:[#allocation7 + $0x202]] }
  0x6b   : > { %v402_v12 = vmul.f32 %v401_v6, %v1049_v0  ;;  %v413_v13 = vmul.f32 %v412_v7, %v1119_v51  ;;  %v415_v14 = vstv %s1112_s23  ;;  %v419_v15 = vstv %s1114_s25  ;;  %s1170_s23 = sld [smem:[#allocation9 + $0x1]]  ;;  %s656_s25 = sld [smem:[#allocation9 + $0x2]] }
  0x6c   : > { %v354_v16 = vmax.f32 %v353_v8, 0.0  ;;  %v378_v17 = vadd.f32 %v376_v60, %v371_v9  ;;  %v392_v18 = vadd.f32 %v390_v10, %v385_v58  ;;  %v416_v19 = vmul.f32 %v415_v14, %v326_v4 }
  0x6d   : > { %v404_v20 = vrot.slane %v402_v12, 3  ;;  %v408_v21 = vstv %s1123_s12  ;;  %v423_v22 = vstv %s1125_s30  ;;  %v434_v26 = vstv %s1128_s6  ;;  %s263_s12 = sand.u32 1, %s865_s19   ;;  %s658_s6 = sshll.u32 %s931_s22, 6 }
  0x6e   : > { %v381_v0 = vadd.f32 %v380_v5, %v378_v17  ;;  %v399_v23 = vadd.f32 %v397_v11, %v392_v18  ;;  %v417_v24 = vadd.f32 %v416_v19, %v413_v13  ;;  %v420_v25 = vmul.f32 %v419_v15, %v354_v16  ;;  %s616_s30 = sshll.u32 %s263_s12, 2 }
  0x6f   : > { %v437_v27 = vstv %s1130_s11  ;;  %v441_v28 = vstv %s1134_s9  ;;  %v445_v29 = vstv %s1136_s15  ;;  %v435_v33 = vmul.f32 %v434_v26, %v1119_v51  ;;  %s265_s11 = scalar_lea.vmem [#allocation10], %s616_s30 }
  0x70   : > { %v382_v30 = vmax.f32 %v381_v0, 0.0  ;;  %v406_v31 = vadd.f32 %v404_v20, %v399_v23  ;;  %v421_v32 = vadd.f32 %v420_v25, %v417_v24  ;;  %v427_v34 = vstv %s1143_s26  ;;  %s502_s9 = sshll.u32 %s265_s11, 4  ;;  %s1191_s9 = int_to_ptr.vmem [resolvable:$true] %s502_s9 }
  0x71   : > { %v438_v35 = vmul.f32 %v437_v27, %v326_v4  ;;  %v442_v36 = vmul.f32 %v441_v28, %v354_v16  ;;  %v449_v37 = vstv %s1145_s10  ;;  %v456_v41 = vstv %s1147_s7  ;;  %s1189_s10 = scalar_lea.hbm %s1238_s5, %s658_s6  ;;  %s489_s7 = scalar_lea.sflag [#allocation3], %s263_s12 }
  0x72   : > { %v409_v38 = vadd.f32 %v408_v21, %v406_v31  ;;  %v424_v39 = vmul.f32 %v423_v22, %v382_v30  ;;  %v446_v40 = vmul.f32 %v445_v29, %v382_v30  ;;  %v457_v43 = vmul.f32 %v456_v41, %v1119_v51  ;;  %s799_s22 = scalar_lea.vmem %s1191_s9, 64 }
  0x73   : > { %v439_v42 = vadd.f32 %v438_v35, %v435_v33  ;;  %v459_v44 = vstv %s1153_s13  ;;  %v463_v45 = vstv %s1155_s8  ;;  %v467_v52 = vstv %s1159_s14  ;;  %p800_p4 = scmp.ne.s32.totalorder %s1191_s9, %s799_s22  ;;  %s879_s13 = smov [#allocation10]  }
  0x74   : > { %v410_v46 = vmax.f32 %v409_v38, 0.0  ;;  %v425_v47 = vadd.f32 %v424_v39, %v421_v32  ;;  %v460_v48 = vmul.f32 %v459_v44, %v326_v4  ;;  %v464_v49 = vmul.f32 %v463_v45, %v354_v16  ;;  %s803_s8 = sshll.u32 %s879_s13, 4  ;;  %s804_s8 = int_to_ptr.vmem [resolvable:$false] %s803_s8 }
  0x75   : > { %v443_v50 = vadd.f32 %v442_v36, %v439_v42  ;;  %v471_v53 = vstv %s1161_s16  ;;  %v468_v57 = vmul.f32 %v467_v52, %v382_v30  ;;  %v431_v58 = vstv %s1163_s17  ;;  %p801_p7 = pnand %p800_p4, %p948_p5  ;;  %s805_s14 = scalar_lea.vmem %s804_s8, 128 }
  0x76   : > { %v428_v54 = vmul.f32 %v427_v34, %v410_v46  ;;  %v450_v55 = vmul.f32 %v449_v37, %v410_v46  ;;  %v461_v56 = vadd.f32 %v460_v48, %v457_v43  ;;  %v453_v60 = vstv %s1170_s23  ;;  %p806_p8 = scmp.lt.s32.totalorder %s1191_s9, %s804_s8  ;;  %p807_p13 = scmp.lt.s32.totalorder %s805_s14, %s799_s22 }
  0x77   : > { %v447_v51 = vadd.f32 %v446_v40, %v443_v50  ;;  %v472_v62 = vmul.f32 %v471_v53, %v410_v46  ;;  %v475_v4 = vstv %s656_s25  ;;  %p802_p11 = pneg %p801_p7 }
  0x78   : > { %v429_v59 = vadd.f32 %v428_v54, %v425_v47  ;;  %v465_v61 = vadd.f32 %v464_v49, %v461_v56  ;;  %p808_p1 = por %p807_p13, %p806_p8 }
  0x79   : > { %v451_v63 = vadd.f32 %v450_v55, %v447_v51 }
  0x7a   : > { %v469_v1 = vadd.f32 %v468_v57, %v465_v61  ;;  %v432_v2 = vadd.f32 %v431_v58, %v429_v59  ;;  %p809_p0 = pnand %p808_p1, %p802_p11 }
  0x7b   : > { %v454_v3 = vadd.f32 %v453_v60, %v451_v63 }
  0x7c   : > { %v473_v5 = vadd.f32 %v472_v62, %v469_v1 }
  0x7d   : > { %v478_v6 = vrot.slane %v454_v3, 7 }
  0x7e   : > { %v476_v7 = vadd.f32 %v475_v4, %v473_v5 }
  0x7f   : > { %v484_v8 = vsel %vm483_vm0, %v432_v2, %v478_v6 }
  0x80   : > { %v481_v9 = vrot.slane %v476_v7, 6 }
  0x82   : > { %v486_v10 = vsel %vm485_vm1, %v484_v8, %v481_v9 }
  0x83   : > { %487 = vst [vmem:[%s265_s11] sm:$0x7] %v486_v10 }
  0x84   : > { %812 = shalt.err (!%p809_p0)
}
  0x85   : > { %s813_s16 = scalar_lea.hbm %s1189_s10, 64  ;;  %s817_s25 = scalar_lea.hbm %s1238_s5, 192 }
  0x86   : > { %p814_p2 = scmp.ne.s32.totalorder %s1189_s10, %s813_s16  ;;  %p818_p12 = scmp.lt.u32.totalorder %s1189_s10, %s1238_s5 }
  0x87   : > { %p819_p10 = scmp.lt.u32.totalorder %s817_s25, %s813_s16  ;;  %p821_p7 = scmp.lt.u32.totalorder %s813_s16, %s1189_s10 }
  0x88   : > { %p815_p9 = pnand %p814_p2, %p948_p5 }
  0x89   : > { %p820_p4 = por %p819_p10, %p818_p12 }
  0x8a   : > { %p816_p3 = pneg %p815_p9 }
  0x8b   : > { %p822_p11 = por %p821_p7, %p820_p4 }
  0x8d   : > { %p823_p8 = pnand %p822_p11, %p816_p3 }
  0x8f   : > { %826 = shalt.err (!%p823_p8)
}
  0x90   : > { %677 = dma.vmem_to_hbm [thread:$0]  (%p948_p5), %s1191_s9, 64, %s1189_s10, %s489_s7  }
  0x91 PF: > { %p704_p13 = scmp.ge.s32.totalorder %s873_s21, 2  ;;  %s514_s6 = sand.u32 1, %s861_s18  }
  0x92   : > { %s515_s11 = scalar_lea.sflag [#allocation3], %s514_s6 }
  0x93   : > { %p693_p1 = pnand %p704_p13, %p952_p6 }
  0x95   : > { %856 = dma.done.wait (!%p693_p1), %s515_s11, 64  }
  0x96   : > { %858 = vsyncadd (!%p693_p1), %s515_s11, 4294967232  ;;  %p18_p0 = scmp.ge.s32.totalorder %s935_s24, 5   ;;  %s1250_s18 = smov %s865_s19 }
  0x97   : > { %s1251_s19 = smov %s869_s20  ;;  %s1252_s20 = smov %s946_s27 }
  0x98   : > { %s1253_s21 = smov %s935_s24  ;;  %20 = sbr.rel (!%p18_p0) target bundleno = 6 (0x6), region = 93 }
  0x9f   :  { %520 = vsyncpa [#allocation3], 1 }
  0xa0   :  { %522 = vsyncpa [#allocation3 + $0x1], 1 }
  0xa1   :  { %523 = vsyncpa [#allocation4], 1 }
  0xa2   :  { %525 = vsyncpa [#allocation4 + $0x1], 1 }
  0xa3   :  { %526 = vsyncpa [#allocation5], 1 }
  0xa4   :  { %528 = vsyncpa [#allocation5 + $0x1], 1 }
  0xa5   :  { %529 = vsyncpa [#allocation8], 1 }

</bundles_post_ra>
